<compile_context>
chip_gen: v5e
topology: v5e:2x2
jax: 0.10.0
libtpu: 0.0.40
codegen_flags: <defaults>
</compile_context>

<pallas_src>
import jax
import jax.numpy as jnp
from jax import lax
from jax.experimental import pallas as pl
from jax.experimental.pallas import tpu as pltpu


def _round_up(n, m):
    return ((n + m - 1) // m) * m


# Parameter-slab layout (single resident (88,128) f32 input):
#   rows  0:16, cols 0:8   -> W1  (16,8)  (contraction dim padded 6->8 w/ zeros)
#   rows  0:16, col  8     -> b1  (16,1)
#   rows 16:80, cols 0:16  -> W2  (64,16)
#   rows 16:80, col  16    -> b2  (64,1)
#   row  80,    cols 0:64  -> W3  (1,64)
#   row  80,    col  64    -> b3  (1,1)
_SLAB_ROWS = 88
_SLAB_COLS = 128


def mlp_kernel(x_ref, p_ref, o_ref):
    # x_ref: (8, TB) batch-on-lanes input tile; o_ref: (1, TB) lane-dense output.
    # Static slices of the resident parameter slab (loaded once per grid step).
    w1 = p_ref[0:16, 0:8]        # (16, 8)
    b1 = p_ref[0:16, 8:9]        # (16, 1)
    w2 = p_ref[16:80, 0:16]      # (64, 16)
    b2 = p_ref[16:80, 16:17]     # (64, 1)
    w3 = p_ref[80:81, 0:64]      # (1, 64)
    b3 = p_ref[80:81, 64:65]     # (1, 1)

    tb = x_ref.shape[1]
    # Lane-chunk the batch tile so h2=(64,chunk) f32 stays <= 32 vregs.
    chunk = next(c for c in (512, 384, 256, 128) if tb % c == 0)
    nchunks = tb // chunk

    def compute(off):
        x = x_ref[:, pl.ds(off, chunk)]                                 # (8, chunk)
        h1 = jnp.dot(w1, x, preferred_element_type=jnp.float32) + b1
        h1 = jnp.maximum(h1, 0.0)                                       # (16, chunk)
        h2 = jnp.dot(w2, h1, preferred_element_type=jnp.float32) + b2
        h2 = jnp.maximum(h2, 0.0)                                       # (64, chunk)
        # Degenerate N=1 layer on the MXU (VALU is the binding slot here).
        h3 = jnp.dot(w3, h2, preferred_element_type=jnp.float32) + b3   # (1, chunk)
        o_ref[:, pl.ds(off, chunk)] = jax.nn.sigmoid(h3)                # lane-dense

    if nchunks == 1:
        compute(0)
    else:
        def body(c, carry):
            compute(pl.multiple_of(c * chunk, chunk))
            return carry
        lax.fori_loop(0, nchunks, body, 0, unroll=True)


def _pack_params(params):
    w1, b1, w2, b2, w3, b3 = params
    slab = jnp.zeros((_SLAB_ROWS, _SLAB_COLS), jnp.float32)
    slab = slab.at[0:16, 0:6].set(w1.astype(jnp.float32))
    slab = slab.at[0:16, 8].set(b1.astype(jnp.float32))
    slab = slab.at[16:80, 0:16].set(w2.astype(jnp.float32))
    slab = slab.at[16:80, 16].set(b2.astype(jnp.float32))
    slab = slab.at[80, 0:64].set(w3.reshape(64).astype(jnp.float32))
    slab = slab.at[80, 64].set(jnp.asarray(b3, jnp.float32).reshape(()))
    return slab


def mlp_forward(x, params, *, tb=2048, split_for_two_cores=True):
    """x: (B, 6) float32; params in PyTorch layout ((out,in) weights, (out,) biases).
    Returns (B, 1) float32, matching
    nn.Sequential(Linear(6,16), ReLU, Linear(16,64), ReLU, Linear(64,1), Sigmoid)."""
    B = x.shape[0]

    # Batch maps to lanes -> tile must be a multiple of 128.
    tb = max(128, (tb // 128) * 128)
    if split_for_two_cores and B > 128:
        # v7x: keep >= 2 grid steps so ("parallel",) sharding can use both
        # TensorCores (no effect on single-TC v5e/v6e).
        tb = min(tb, _round_up(-(-B // 2), 128))
    tb = min(tb, _round_up(B, 128))
    b_pad = _round_up(B, tb)
    grid = (b_pad // tb,)

    # Transposed, zero-padded, lane-dense input: K padded 6->8 (clean 8-sublane
    # MXU operand), batch padded to a tile multiple (padded columns are zero).
    xt = jnp.pad(x.T.astype(jnp.float32), ((0, 2), (0, b_pad - B)))   # (8, b_pad)
    slab = _pack_params(params)

    out = pl.pallas_call(
        mlp_kernel,
        out_shape=jax.ShapeDtypeStruct((1, b_pad), jnp.float32),
        grid=grid,
        in_specs=[
            pl.BlockSpec((8, tb), lambda i: (0, i)),                    # x tile
            pl.BlockSpec((_SLAB_ROWS, _SLAB_COLS), lambda i: (0, 0)),   # resident params
        ],
        out_specs=pl.BlockSpec((1, tb), lambda i: (0, i)),
        compiler_params=pltpu.CompilerParams(
            dimension_semantics=("parallel",),
        ),
    )(xt, slab)

    return out[:, :B].T                                                 # (B, 1)


def mlp_reference(x, params):
    # Pure-JAX reference with PyTorch semantics (x @ W.T + b).
    w1, b1, w2, b2, w3, b3 = params
    h1 = jnp.maximum(x @ w1.T + b1, 0.0)
    h2 = jnp.maximum(h1 @ w2.T + b2, 0.0)
    return jax.nn.sigmoid(h2 @ w3.T + b3)


def init_params(key):
    # PyTorch nn.Linear default init: U(-1/sqrt(fan_in), +1/sqrt(fan_in)),
    # weights stored (out_features, in_features), bias (out_features,).
    def linear(key, fan_in, fan_out):
        kw, kb = jax.random.split(key)
        bound = 1.0 / jnp.sqrt(float(fan_in))
        w = jax.random.uniform(kw, (fan_out, fan_in), jnp.float32, -bound, bound)
        b = jax.random.uniform(kb, (fan_out,), jnp.float32, -bound, bound)
        return w, b

    k1, k2, k3 = jax.random.split(key, 3)
    w1, b1 = linear(k1, 6, 16)
    w2, b2 = linear(k2, 16, 64)
    w3, b3 = linear(k3, 64, 1)
    return (w1, b1, w2, b2, w3, b3)


def normalization(component):
    # Dataframe-style per-column min-max normalization (plain JAX glue).
    cmin = component.min(axis=0, keepdims=True)
    cmax = component.max(axis=0, keepdims=True)
    rng = jnp.where(cmax - cmin == 0.0, 1.0, cmax - cmin)  # guard constant columns
    return (component - cmin) / rng


if __name__ == "__main__":
    key = jax.random.PRNGKey(0)
    k_params, k_x, k_x2, k_x3 = jax.random.split(key, 4)
    params = init_params(k_params)

    # Synthetic "Titanic features": batch=8, 6 features (Pclass, Sex, Age, SibSp, Parch, Fare)
    raw = jax.random.uniform(k_x, (8, 6), jnp.float32, 0.0, 10.0)
    x = normalization(raw)
    out = jax.block_until_ready(mlp_forward(x, params))
    ref = mlp_reference(x, params)
    assert out.shape == (8, 1)
    assert jnp.allclose(out, ref, atol=1e-5, rtol=1e-5)

    # Multi-grid-step path: ragged batch, grid=(2,), resident weight slab reused.
    raw2 = jax.random.uniform(k_x2, (300, 6), jnp.float32, 0.0, 10.0)
    x2 = normalization(raw2)
    out2 = jax.block_until_ready(mlp_forward(x2, params))
    ref2 = mlp_reference(x2, params)
    assert out2.shape == (300, 1)
    assert jnp.allclose(out2, ref2, atol=1e-5, rtol=1e-5)

    # Large-tile path: single 1024-lane block processed by the unrolled
    # 512-lane inner chunk loop (2 chunks).
    raw3 = jax.random.uniform(k_x3, (1000, 6), jnp.float32, 0.0, 10.0)
    x3 = normalization(raw3)
    out3 = jax.block_until_ready(
        mlp_forward(x3, params, tb=1024, split_for_two_cores=False))
    ref3 = mlp_reference(x3, params)
    assert out3.shape == (1000, 1)
    assert jnp.allclose(out3, ref3, atol=1e-5, rtol=1e-5)

    print("KERNEL_OK")
</pallas_src>

<mosaic_0001>
module attributes {stable_mosaic.version = 11 : i64} {
  func.func @mlp_kernel(%arg0: i32, %arg1: memref<8x128xf32, #tpu.memory_space<vmem>>, %arg2: memref<88x128xf32, #tpu.memory_space<vmem>>, %arg3: memref<1x128xf32, #tpu.memory_space<vmem>>) attributes {dimension_semantics = [#tpu.dimension_semantics<parallel>], iteration_bounds = array<i64: 1>, scalar_prefetch = 0 : i64, scratch_operands = 0 : i64, tpu.core_type = #tpu.core_type<tc>, window_params = [{transform_indices = @transform_0, window_bounds = array<i64: 8, 128>}, {pipeline_mode = #tpu.pipeline_mode<synchronous>, transform_indices = @transform_1, window_bounds = array<i64: 88, 128>}, {transform_indices = @transform_2, window_bounds = array<i64: 1, 128>}]} {
    %c0 = arith.constant 0 : index
    %c0_0 = arith.constant 0 : index
    %0 = vector.load %arg2[%c0, %c0_0] : memref<88x128xf32, #tpu.memory_space<vmem>>, vector<16x8xf32>
    %c0_1 = arith.constant 0 : index
    %c8 = arith.constant 8 : index
    %1 = vector.load %arg2[%c0_1, %c8] : memref<88x128xf32, #tpu.memory_space<vmem>>, vector<16x1xf32>
    %c16 = arith.constant 16 : index
    %c0_2 = arith.constant 0 : index
    %2 = vector.load %arg2[%c16, %c0_2] : memref<88x128xf32, #tpu.memory_space<vmem>>, vector<64x16xf32>
    %c16_3 = arith.constant 16 : index
    %c16_4 = arith.constant 16 : index
    %3 = vector.load %arg2[%c16_3, %c16_4] : memref<88x128xf32, #tpu.memory_space<vmem>>, vector<64x1xf32>
    %c80 = arith.constant 80 : index
    %c0_5 = arith.constant 0 : index
    %4 = vector.load %arg2[%c80, %c0_5] : memref<88x128xf32, #tpu.memory_space<vmem>>, vector<1x64xf32>
    %c80_6 = arith.constant 80 : index
    %c64 = arith.constant 64 : index
    %5 = vector.load %arg2[%c80_6, %c64] : memref<88x128xf32, #tpu.memory_space<vmem>>, vector<1x1xf32>
    %c0_7 = arith.constant 0 : index
    %c0_8 = arith.constant 0 : index
    %6 = vector.load %arg1[%c0_7, %c0_8] : memref<8x128xf32, #tpu.memory_space<vmem>>, vector<8x128xf32>
    %cst = arith.constant dense<0.000000e+00> : vector<16x128xf32>
    %7 = tpu.matmul %0, %6, %cst {dimension_numbers = #tpu.dot_dimension_numbers<[1], [0], [0], [1], [0, 0, 1, 1], [], []>} : vector<16x8xf32>, vector<8x128xf32>, vector<16x128xf32> -> vector<16x128xf32>
    %8 = vector.broadcast %1 : vector<16x1xf32> to vector<16x128xf32>
    %9 = arith.addf %7, %8 : vector<16x128xf32>
    %cst_9 = arith.constant 0.000000e+00 : f32
    %10 = vector.broadcast %cst_9 : f32 to vector<16x128xf32>
    %11 = arith.maximumf %9, %10 : vector<16x128xf32>
    %cst_10 = arith.constant dense<0.000000e+00> : vector<64x128xf32>
    %12 = tpu.matmul %2, %11, %cst_10 {dimension_numbers = #tpu.dot_dimension_numbers<[1], [0], [0], [1], [0, 0, 1, 1], [], []>} : vector<64x16xf32>, vector<16x128xf32>, vector<64x128xf32> -> vector<64x128xf32>
    %13 = vector.broadcast %3 : vector<64x1xf32> to vector<64x128xf32>
    %14 = arith.addf %12, %13 : vector<64x128xf32>
    %cst_11 = arith.constant 0.000000e+00 : f32
    %15 = vector.broadcast %cst_11 : f32 to vector<64x128xf32>
    %16 = arith.maximumf %14, %15 : vector<64x128xf32>
    %cst_12 = arith.constant dense<0.000000e+00> : vector<1x128xf32>
    %17 = tpu.matmul %4, %16, %cst_12 {dimension_numbers = #tpu.dot_dimension_numbers<[1], [0], [0], [1], [0, 0, 1, 1], [], []>} : vector<1x64xf32>, vector<64x128xf32>, vector<1x128xf32> -> vector<1x128xf32>
    %18 = vector.broadcast %5 : vector<1x1xf32> to vector<1x128xf32>
    %19 = arith.addf %17, %18 : vector<1x128xf32>
    %20 = arith.negf %19 : vector<1x128xf32>
    %21 = math.exp %20 : vector<1x128xf32>
    %cst_13 = arith.constant 1.000000e+00 : f32
    %22 = vector.broadcast %cst_13 : f32 to vector<1x128xf32>
    %23 = arith.addf %22, %21 : vector<1x128xf32>
    %24 = arith.divf %22, %23 : vector<1x128xf32>
    %c0_14 = arith.constant 0 : index
    %c0_15 = arith.constant 0 : index
    %25 = vector.load %arg3[%c0_14, %c0_15] : memref<1x128xf32, #tpu.memory_space<vmem>>, vector<1x128xf32>
    tpu.vector_store %arg3[%c0_14, %c0_15], %24 {strides = array<i32>} : memref<1x128xf32, #tpu.memory_space<vmem>>, vector<1x128xf32>,
    return
  }
  func.func @transform_0(%arg0: i32) -> (i32, i32) {
    %c0_i32 = arith.constant 0 : i32
    %c0_i32_0 = arith.constant 0 : i32
    return %c0_i32, %arg0 : i32, i32
  }
  func.func @transform_1(%arg0: i32) -> (i32, i32) {
    %c0_i32 = arith.constant 0 : i32
    %c0_i32_0 = arith.constant 0 : i32
    %c0_i32_1 = arith.constant 0 : i32
    return %c0_i32, %c0_i32_0 : i32, i32
  }
  func.func @transform_2(%arg0: i32) -> (i32, i32) {
    %c0_i32 = arith.constant 0 : i32
    %c0_i32_0 = arith.constant 0 : i32
    return %c0_i32, %arg0 : i32, i32
  }
}

</mosaic_0001>

<bundles_post_ra>
// kernel: tpu_custom_call.1
= control target key start
LH: loop header
LB: loop body
LE: loop exit
PB: predicated region body
PF: predicated region fallthrough
CT: control target
= control target key end

     0   :  { %7 = vsyncpa [#allocation3], 0  ;;  %s410_s0 = inlined_call_operand.hbm [shape: f32[8,128], index: 0, kind: input, shape index: {}]   ;;  %s411_s1 = inlined_call_operand.hbm [shape: f32[88,128], index: 1, kind: input, shape index: {}]   ;;  %s412_s2 = inlined_call_operand.hbm [shape: f32[1,128], index: 2, kind: output, shape index: {}]  }
   0x1   :  { %8 = vsyncpa [#allocation6], 0 }
   0x2   :  { %9 = vsyncpa [#allocation4], 0  ;;  %s15_s11 = sshll.u32 %s410_s0, 4  ;;  %s378_s12 = smov [#allocation2]   ;;  %s16_s11 = int_to_ptr.hbm [resolvable:$true] %s15_s11 }
   0x3   :  { %s17_s13 = sshll.u32 %s378_s12, 4  ;;  %s25_s16 = sshll.u32 %s411_s1, 4  ;;  %s18_s13 = int_to_ptr.vmem [resolvable:$true] %s17_s13  ;;  %s26_s16 = int_to_ptr.hbm [resolvable:$true] %s25_s16 }
   0x4   :  { %20 = dma.hbm_to_vmem [thread:$0]  %s16_s11, 128, %s18_s13, [#allocation3]  }
   0x5   :  { %s379_s17 = smov [#allocation5]   ;;  %s380_s19 = smov 128  }
   0x6   :  { %s27_s18 = sshll.u32 %s379_s17, 4  ;;  %s381_s20 = smov 8   ;;  %s28_s18 = int_to_ptr.vmem [resolvable:$true] %s27_s18 }
   0x7   :  { %33 = dma.hbm_to_vmem [thread:$0]  %s26_s16, 1408, %s28_s18, [#allocation6], %s380_s19, %s380_s19, %s381_s20  }
   0x8   :  { %372 = dma.done.wait [#allocation3], 128  }
   0x9   :  { %373 = vsyncadd [#allocation3], 4294967168 }
   0xa   :  { %374 = dma.done.wait [#allocation6], 1408  }
   0xb   :  { %375 = vsyncadd [#allocation6], 4294965888  ;;  %v382_v0 = vmov 8   ;;  %vm64_vm0 = vcmask 64512   ;;  %v53_v1 = vld [vmem:[#allocation2] sm:$0xff]  ;;  %v42_v2 = vld [vmem:[#allocation5] sm:$0xff] }
   0xc   :  { %290 = vset.pattern.permute.xlu0 %v382_v0  ;;  %v43_v3 = vld [vmem:[#allocation5 + $0x8] sm:$0xff]  ;;  %84 = vmatpush.msra.mxu2 %v53_v1  ;;  %v383_v5 = vmov 16   ;;  %v49_v6 = vld [vmem:[#allocation5 + $0x38] sm:$0xff]  ;;  %v50_v7 = vld [vmem:[#allocation5 + $0x40] sm:$0xff]  ;;  %vm134_vm1 = vcmask 130048   ;;  %v384_v26 = vmov 64  }
   0xd   :  { %61 = vperm.xlu0 %290, %v43_v3   ;;  %266 = vmatmul.msk.f32.vlgmr.msra.gmra.mxu2 %vm64_vm0, %v42_v2  ;;  %v51_v4 = vld [vmem:[#allocation5 + $0x48] sm:$0xff]  ;;  %v46_v10 = vld [vmem:[#allocation5 + $0x20] sm:$0xff]  ;;  %v48_v12 = vld [vmem:[#allocation5 + $0x30] sm:$0xff]  ;;  %vm205_vm2 = vcmask 523264   ;;  %s385_s0 = smov [#allocation7]   ;;  %s255_s23 = sshll.u32 %s412_s2, 4  ;;  %s256_s23 = int_to_ptr.hbm [resolvable:$true] %s255_s23 }
   0xe   :  { %291 = vset.pattern.permute.xlu1 %v383_v5  ;;  %292 = vset.pattern.permute.xlu2 %v383_v5  ;;  %v47_v8 = vld [vmem:[#allocation5 + $0x28] sm:$0xff]  ;;  %v44_v14 = vld [vmem:[#allocation5 + $0x10] sm:$0xff]  ;;  %v45_v18 = vld [vmem:[#allocation5 + $0x18] sm:$0xff]  ;;  %s253_s1 = sshll.u32 %s385_s0, 4  ;;  %s254_s1 = int_to_ptr.vmem [resolvable:$true] %s253_s1 }
   0xf   :  { %131 = vperm.xlu1 %291, %v51_v4   ;;  %121 = vperm.xlu2 %292, %v49_v6   ;;  %v52_v25 = vld [vmem:[#allocation5 + $0x50] sm:$0x1] }
  0x15   :  { %56 = vperm.xlu0 %290, %v42_v2   ;;  %267 = vmatmul.msk.f32.gmra.mxu2 %vm64_vm0, %v43_v3 }
  0x17   :  { %126 = vperm.xlu1 %291, %v50_v7   ;;  %116 = vperm.xlu2 %292, %v48_v12  }
  0x1d   :  { %293 = vset.pattern.permute.xlu0 %v383_v5 }
  0x1e   :  { %111 = vperm.xlu0 %293, %v47_v8  }
  0x1f   :  { %106 = vperm.xlu1 %291, %v46_v10   ;;  %101 = vperm.xlu2 %292, %v45_v18  }
  0x26   :  { %295 = vset.pattern.permute.xlu0 %v384_v26 }
  0x27   :  { %96 = vperm.xlu1 %291, %v44_v14   ;;  %294 = vset.pattern.permute.xlu2 %v384_v26 }
  0x28   :  { %202 = vperm.xlu2 %294, %v52_v25  }
  0x69   :  { %v122_v24 = vpop.permute.xlu2 %121 }
  0x71   :  { %v117_v30 = vpop.permute.xlu2 %116 }
  0x79   :  { %v102_v44 = vpop.permute.xlu2 %101 }
  0x7f   :  { %v62_v9 = vpop.permute.xlu0 %61 }
  0x81   :  { %v132_v21 = vpop.permute.xlu1 %131 }
  0x82   :  { %v203_v55 = vpop.permute.xlu2 %202 }
  0x87   :  { %v57_v13 = vpop.permute.xlu0 %56 }
  0x89   :  { %v127_v27 = vpop.permute.xlu1 %126 }
  0x90   :  { %v86_v11 = vpop.f32.mrf.mxu2  ;;  %v112_v39 = vpop.permute.xlu0 %111 }
  0x91   :  { %v87_v16 = vadd.f32 %v86_v11, %v57_v13  ;;  %v107_v32 = vpop.permute.xlu1 %106 }
  0x93   :  { %v92_v20 = vmax.f32 %v87_v16, 0.0 }
  0x98   :  { %v89_v15 = vpop.f32.mrf.mxu2 }
  0x99   :  { %v90_v17 = vadd.f32 %v89_v15, %v62_v9  ;;  %v97_v48 = vpop.permute.xlu1 %96 }
  0x9b   :  { %v93_v19 = vmax.f32 %v90_v17, 0.0 }
  0x9d   :  { %165 = vmatpush.msra.mxu0 %v93_v19  ;;  %278 = vmatpush.msra.mxu1 %v93_v19 }
  0x9e   :  { %279 = vmatpush.msra.mxu3 %v93_v19 }
  0x9f   :  { %166 = vmatpush.msra.mxu0 %v92_v20  ;;  %280 = vmatpush.msra.mxu1 %v92_v20 }
  0xa0   :  { %281 = vmatpush.msra.mxu3 %v92_v20  ;;  %270 = vmatmul.msk.f32.vlgmr.msra.gmra.mxu1 %vm134_vm1, %v46_v10 }
  0xa1   :  { %273 = vmatmul.msk.f32.vlgmr.msra.gmra.mxu3 %vm134_vm1, %v49_v6  ;;  %268 = vmatmul.msk.f32.vlgmr.msra.gmra.mxu0 %vm134_vm1, %v44_v14 }
  0xa8   :  { %271 = vmatmul.msk.f32.gmra.mxu1 %vm134_vm1, %v47_v8 }
  0xa9   :  { %274 = vmatmul.msk.f32.gmra.mxu3 %vm134_vm1, %v50_v7  ;;  %269 = vmatmul.msk.f32.gmra.mxu0 %vm134_vm1, %v45_v18 }
  0xb0   :  { %272 = vmatmul.msk.f32.gmra.mxu1 %vm134_vm1, %v48_v12 }
  0xb1   :  { %275 = vmatmul.msk.f32.gmra.mxu3 %vm134_vm1, %v51_v4 }
 0x11d   :  { %v174_v22 = vpop.f32.mrf.mxu1 }
 0x11e   :  { %v168_v31 = vpop.f32.mrf.mxu0  ;;  %v175_v46 = vadd.f32 %v174_v22, %v107_v32 }
 0x11f   :  { %v169_v52 = vadd.f32 %v168_v31, %v97_v48 }
 0x120   :  { %v194_v51 = vmax.f32 %v175_v46, 0.0 }
 0x121   :  { %v192_v54 = vmax.f32 %v169_v52, 0.0 }
 0x124   :  { %v183_v23 = vpop.f32.mrf.mxu3 }
 0x125   :  { %v177_v28 = vpop.f32.mrf.mxu1  ;;  %v184_v37 = vadd.f32 %v183_v23, %v122_v24 }
 0x126   :  { %v178_v43 = vadd.f32 %v177_v28, %v112_v39  ;;  %v171_v45 = vpop.f32.mrf.mxu0 }
 0x127   :  { %v197_v42 = vmax.f32 %v184_v37, 0.0  ;;  %v172_v49 = vadd.f32 %v171_v45, %v102_v44 }
 0x128   :  { %v195_v50 = vmax.f32 %v178_v43, 0.0 }
 0x129   :  { %v193_v53 = vmax.f32 %v172_v49, 0.0 }
 0x12c   :  { %v186_v29 = vpop.f32.mrf.mxu3 }
 0x12d   :  { %v187_v34 = vadd.f32 %v186_v29, %v127_v27  ;;  %v180_v36 = vpop.f32.mrf.mxu1 }
 0x12e   :  { %v181_v41 = vadd.f32 %v180_v36, %v117_v30 }
 0x12f   :  { %v198_v40 = vmax.f32 %v187_v34, 0.0 }
 0x130   :  { %v196_v47 = vmax.f32 %v181_v41, 0.0 }
 0x134   :  { %v189_v33 = vpop.f32.mrf.mxu3 }
 0x135   :  { %v190_v35 = vadd.f32 %v189_v33, %v132_v21 }
 0x137   :  { %v199_v38 = vmax.f32 %v190_v35, 0.0 }
 0x139   :  { %216 = vmatpush.msrb.mxu2 %v199_v38 }
 0x13b   :  { %217 = vmatpush.msrb.mxu2 %v198_v40 }
 0x13d   :  { %218 = vmatpush.msrb.mxu2 %v197_v42 }
 0x13f   :  { %219 = vmatpush.msrb.mxu2 %v196_v47 }
 0x141   :  { %220 = vmatpush.msrb.mxu2 %v195_v50 }
 0x143   :  { %221 = vmatpush.msrb.mxu2 %v194_v51 }
 0x145   :  { %222 = vmatpush.msrb.mxu2 %v193_v53 }
 0x147   :  { %223 = vmatpush.msrb.mxu2 %v192_v54 }
 0x148   :  { %276 = vmatmul.msk.f32.vlgmr.msrb.gmra.mxu2 %vm205_vm2, %v52_v25 }
 0x1cb   :  { %v225_v56 = vpop.f32.mrf.mxu2 }
 0x1cc   :  { %v226_v57 = vadd.f32 %v225_v56, %v203_v55 }
 0x1ce   :  { %v277_v58 = vmul.f32 -1.442695, %v226_v57 }
 0x1d0   :  { %296 = vpow2.f32 %v277_v58 }
 0x1d6   :  { %v297_v59 = vpop.eup %296 }
 0x1d7   :  { %v231_v60 = vadd.f32 1.0, %v297_v59 }
 0x1d9   :  { %298 = vrcp.f32 %v231_v60  ;;  %v243_v0 = vand.u32 2147483648, %v231_v60  ;;  %v241_v2 = vand.u32 2147483647, %v231_v60  ;;  %vm237_vm4 = vweird.f32 %v231_v60 }
 0x1db   :  { %v244_v4 = vor.u32 1.1754944e-38, %v243_v0  ;;  %vm242_vm6 = vcmp.eq.f32.partialorder %v241_v2, 8.507059e+37 }
 0x1df   :  { %v299_v61 = vpop.eup %298 }
 0x1e0   :  { %v233_v62 = vmul.f32 %v299_v61, %v231_v60  ;;  %vm238_vm3 = vweird.f32 %v299_v61 }
 0x1e1   :  { %vm239_vm5 = vmor %vm237_vm4, %vm238_vm3 }
 0x1e2   :  { %v234_v63 = vsub.f32 1.0, %v233_v62 }
 0x1e4   :  { %v235_v1 = vmul.f32 %v299_v61, %v234_v63 }
 0x1e6   :  { %v236_v3 = vadd.f32 %v299_v61, %v235_v1 }
 0x1e8   :  { %v240_v5 = vsel %vm239_vm5, %v299_v61, %v236_v3 }
 0x1e9   :  { %v245_v6 = vsel %vm242_vm6, %v244_v4, %v240_v5 }
 0x1ea   :  { %247 = vst [vmem:[#allocation7] sm:$0x1] %v245_v6 }
 0x1eb   :  { %258 = dma.vmem_to_hbm [thread:$0]  %s254_s1, 16, %s256_s23, [#allocation4]  }
 0x1ec   :  { %376 = dma.done.wait [#allocation4], 16  }
 0x1ed   :  { %377 = vsyncadd [#allocation4], 4294967280 }
 0x1ee   :  { %263 = vsyncpa [#allocation3], 1 }
 0x1ef   :  { %264 = vsyncpa [#allocation6], 1 }
 0x1f0   :  { %265 = vsyncpa [#allocation4], 1 }

</bundles_post_ra>
